<compile_context>
chip_gen: v7x
topology: tpu7x:2x2x1
jax: 0.10.0
libtpu: 0.0.40
codegen_flags: <defaults>
</compile_context>

<pallas_src>
import functools

import jax
import jax.numpy as jnp
from jax.experimental import pallas as pl
from jax.experimental.pallas import tpu as pltpu

_EPS = 1e-6
_LANES = 128               # lane-dense minor axis
_SUBLANES = 8              # f32 vreg sublanes -> accumulator shape (8, 128)
_ROW_ALIGN = 32            # block row multiple legal for f32 / bf16 / int8
_MAX_TILE_ROWS = 8192      # 8192 * 128 * 4 B = 4 MiB per f32 input per step
_NUM_CORES = 2             # leading "parallel" axis -> megacore sharding on v7x


def _round_up(a, b):
    return (a + b - 1) // b * b


def _charbonnier_kernel(x_ref, y_ref, o_ref, *, tiles_per_core, tile_rows,
                        valid_rows, need_mask):
    c = pl.program_id(0)           # core-shard axis ("parallel")
    i = pl.program_id(1)           # reduction axis ("arbitrary")

    @pl.when(i == 0)
    def _init():
        o_ref[...] = jnp.zeros_like(o_ref)

    # Upcast inside the kernel (no eager wrapper-side astype).
    d = x_ref[...].astype(jnp.float32) - y_ref[...].astype(jnp.float32)
    v = jnp.sqrt(d * d + jnp.float32(_EPS))

    def _accum(vals):
        # (tile_rows,128) -> (tile_rows//8, 8, 128): VPU-only partial adds into
        # the resident (8,128) output accumulator; no per-step XLU reduce.
        o_ref[...] += vals.reshape(-1, _SUBLANES, _LANES).sum(axis=0)

    if need_mask:
        t = c * tiles_per_core + i                 # logical (unclamped) tile id
        is_partial = (t + 1) * tile_rows > valid_rows

        @pl.when(jnp.logical_not(is_partial))      # full tiles: no mask cost
        def _full():
            _accum(v)

        @pl.when(is_partial)                       # boundary / ghost tiles
        def _masked():
            row = jax.lax.broadcasted_iota(jnp.int32, v.shape, 0)
            keep = (t * tile_rows + row) < valid_rows
            _accum(jnp.where(keep, v, jnp.float32(0.0)))
    else:
        _accum(v)


def charbonnier_loss(img0, img1):
    assert img0.shape == img1.shape, (img0.shape, img1.shape)
    x = img0.reshape(-1)
    y = img1.reshape(-1)
    total = x.shape[0]

    valid_rows = total // _LANES          # full lane-dense rows -> kernel
    bulk = valid_rows * _LANES
    tail = total - bulk                   # < 128 leftover elements -> wrapper

    tail_sum = jnp.float32(0.0)
    if tail:
        dt = x[bulk:].astype(jnp.float32) - y[bulk:].astype(jnp.float32)
        tail_sum = jnp.sum(jnp.sqrt(dt * dt + jnp.float32(_EPS)))

    if valid_rows == 0:                   # tiny tensor: nothing for the kernel
        return tail_sum / jnp.float32(total)

    if tail == 0 and valid_rows >= _ROW_ALIGN:
        # Fast path: zero-copy (rows, 128) bitcast views of the HBM buffers.
        x2d = x.reshape(valid_rows, _LANES)
        y2d = y.reshape(valid_rows, _LANES)
    else:
        # Rare / small ragged path: pad up to an aligned row count. Padded rows
        # (and the partial tail row) are excluded by the in-kernel row mask;
        # the tail itself is already counted by `tail_sum` above.
        rows_p = max(_ROW_ALIGN,
                     _round_up(valid_rows + (1 if tail else 0), _ROW_ALIGN))
        pad = rows_p * _LANES - total
        x2d = jnp.pad(x, (0, pad)).reshape(rows_p, _LANES)
        y2d = jnp.pad(y, (0, pad)).reshape(rows_p, _LANES)

    tile_rows = min(_MAX_TILE_ROWS,
                    _round_up(pl.cdiv(valid_rows, _NUM_CORES), _ROW_ALIGN))
    n_tiles = pl.cdiv(valid_rows, tile_rows)
    tiles_per_core = pl.cdiv(n_tiles, _NUM_CORES)
    need_mask = (_NUM_CORES * tiles_per_core * tile_rows) != valid_rows

    def in_index_map(c, i):
        # Clamp so ghost tiles (odd tile counts) re-read a valid block; the
        # in-kernel mask zeroes their contribution.
        return (jnp.minimum(c * tiles_per_core + i, n_tiles - 1), 0)

    kernel = functools.partial(
        _charbonnier_kernel,
        tiles_per_core=tiles_per_core,
        tile_rows=tile_rows,
        valid_rows=valid_rows,
        need_mask=need_mask,
    )

    itemsize = jnp.dtype(img0.dtype).itemsize
    cost = pl.CostEstimate(
        flops=5 * total,
        transcendentals=total,
        bytes_accessed=2 * total * itemsize + _NUM_CORES * _SUBLANES * _LANES * 4,
    )

    partials = pl.pallas_call(
        kernel,
        out_shape=jax.ShapeDtypeStruct((_NUM_CORES, _SUBLANES, _LANES),
                                       jnp.float32),
        grid=(_NUM_CORES, tiles_per_core),
        in_specs=[
            pl.BlockSpec((tile_rows, _LANES), in_index_map),
            pl.BlockSpec((tile_rows, _LANES), in_index_map),
        ],
        out_specs=pl.BlockSpec((None, _SUBLANES, _LANES),
                               lambda c, i: (c, 0, 0)),
        compiler_params=pltpu.CompilerParams(
            dimension_semantics=("parallel", "arbitrary"),
            vmem_limit_bytes=48 * 1024 * 1024,
        ),
        cost_estimate=cost,
    )(x2d, y2d)

    return (jnp.sum(partials) + tail_sum) / jnp.float32(total)


def _reference_loss(img0, img1):
    a = img0.astype(jnp.float32)
    b = img1.astype(jnp.float32)
    return jnp.mean(jnp.sqrt((a - b) ** 2 + jnp.float32(_EPS)))


if __name__ == "__main__":
    key = jax.random.PRNGKey(0)
    loss_fn = jax.jit(charbonnier_loss)

    cases = [
        (2, 4, 32, 64),   # 16384 elems: zero-copy path, both cores full tiles
        (2, 3, 32, 64),   # 12288 elems: zero-copy path with a partial last tile
        (2, 3, 7, 11),    # 462 elems: ragged path (padded bulk + wrapper tail)
    ]
    for idx, shape in enumerate(cases):
        k0, k1 = jax.random.split(jax.random.fold_in(key, idx))
        img0 = jax.random.uniform(k0, shape, jnp.float32)
        img1 = jax.random.uniform(k1, shape, jnp.float32)

        loss = jax.block_until_ready(loss_fn(img0, img1))
        ref = jax.block_until_ready(_reference_loss(img0, img1))

        assert bool(jnp.isfinite(loss)), (shape, loss)
        assert bool(jnp.allclose(loss, ref, rtol=1e-5, atol=1e-6)), (shape, loss, ref)
    print("KERNEL_OK")
</pallas_src>

<mosaic_0001>
module attributes {stable_mosaic.version = 11 : i64} {
  func.func @_charbonnier_kernel(%arg0: i32, %arg1: i32, %arg2: memref<64x128xf32, #tpu.memory_space<vmem>>, %arg3: memref<64x128xf32, #tpu.memory_space<vmem>>, %arg4: memref<1x8x128xf32, #tpu.memory_space<vmem>>) attributes {dimension_semantics = [#tpu.dimension_semantics<parallel>, #tpu.dimension_semantics<arbitrary>], iteration_bounds = array<i64: 2, 1>, scalar_prefetch = 0 : i64, scratch_operands = 0 : i64, tpu.core_type = #tpu.core_type<tc>, window_params = [{transform_indices = @transform_0, window_bounds = array<i64: 64, 128>}, {transform_indices = @transform_1, window_bounds = array<i64: 64, 128>}, {transform_indices = @transform_2, window_bounds = array<i64: 1, 8, 128>}]} {
    %c0_i32 = arith.constant 0 : i32
    %0 = arith.cmpi eq, %arg1, %c0_i32 : i32
    %1 = arith.extui %0 : i1 to i32
    %c0_i32_0 = arith.constant 0 : i32
    %2 = arith.cmpi ne, %1, %c0_i32_0 : i32
    scf.if %2 {
      %cst_11 = arith.constant 0.000000e+00 : f32
      %18 = vector.broadcast %cst_11 : f32 to vector<8x128xf32>
      %c0_12 = arith.constant 0 : index
      %c0_13 = arith.constant 0 : index
      %c0_14 = arith.constant 0 : index
      %19 = vector.load %arg4[%c0_12, %c0_13, %c0_14] : memref<1x8x128xf32, #tpu.memory_space<vmem>>, vector<1x8x128xf32>
      %20 = vector.shape_cast %19 : vector<1x8x128xf32> to vector<8x128xf32>
      %21 = vector.shape_cast %18 : vector<8x128xf32> to vector<1x8x128xf32>
      tpu.vector_store %arg4[%c0_12, %c0_13, %c0_14], %21 {strides = array<i32>} : memref<1x8x128xf32, #tpu.memory_space<vmem>>, vector<1x8x128xf32>,
    } else {
    }
    %c0 = arith.constant 0 : index
    %c0_1 = arith.constant 0 : index
    %3 = vector.load %arg2[%c0, %c0_1] : memref<64x128xf32, #tpu.memory_space<vmem>>, vector<64x128xf32>
    %c0_2 = arith.constant 0 : index
    %c0_3 = arith.constant 0 : index
    %4 = vector.load %arg3[%c0_2, %c0_3] : memref<64x128xf32, #tpu.memory_space<vmem>>, vector<64x128xf32>
    %5 = arith.subf %3, %4 : vector<64x128xf32>
    %6 = arith.mulf %5, %5 : vector<64x128xf32>
    %cst = arith.constant 9.99999997E-7 : f32
    %7 = vector.broadcast %cst : f32 to vector<64x128xf32>
    %8 = arith.addf %6, %7 : vector<64x128xf32>
    %9 = math.sqrt %8 : vector<64x128xf32>
    %c0_4 = arith.constant 0 : index
    %c0_5 = arith.constant 0 : index
    %c0_6 = arith.constant 0 : index
    %10 = vector.load %arg4[%c0_4, %c0_5, %c0_6] : memref<1x8x128xf32, #tpu.memory_space<vmem>>, vector<1x8x128xf32>
    %11 = vector.shape_cast %10 : vector<1x8x128xf32> to vector<8x128xf32>
    %12 = vector.shape_cast %9 : vector<64x128xf32> to vector<8x8x128xf32>
    %cst_7 = arith.constant dense<0.000000e+00> : vector<8x128xf32>
    %13 = vector.multi_reduction <add>, %12, %cst_7 [0] : vector<8x8x128xf32> to vector<8x128xf32>
    %14 = arith.addf %11, %13 : vector<8x128xf32>
    %c0_8 = arith.constant 0 : index
    %c0_9 = arith.constant 0 : index
    %c0_10 = arith.constant 0 : index
    %15 = vector.load %arg4[%c0_8, %c0_9, %c0_10] : memref<1x8x128xf32, #tpu.memory_space<vmem>>, vector<1x8x128xf32>
    %16 = vector.shape_cast %15 : vector<1x8x128xf32> to vector<8x128xf32>
    %17 = vector.shape_cast %14 : vector<8x128xf32> to vector<1x8x128xf32>
    tpu.vector_store %arg4[%c0_8, %c0_9, %c0_10], %17 {strides = array<i32>} : memref<1x8x128xf32, #tpu.memory_space<vmem>>, vector<1x8x128xf32>,
    return
  }
  func.func @transform_0(%arg0: i32, %arg1: i32) -> (i32, i32) {
    %c1_i32 = arith.constant 1 : i32
    %0 = arith.muli %arg0, %c1_i32 : i32
    %1 = arith.addi %0, %arg1 : i32
    %c1_i32_0 = arith.constant 1 : i32
    %2 = arith.minsi %1, %c1_i32_0 : i32
    %c0_i32 = arith.constant 0 : i32
    %c0_i32_1 = arith.constant 0 : i32
    return %2, %c0_i32 : i32, i32
  }
  func.func @transform_1(%arg0: i32, %arg1: i32) -> (i32, i32) {
    %c1_i32 = arith.constant 1 : i32
    %0 = arith.muli %arg0, %c1_i32 : i32
    %1 = arith.addi %0, %arg1 : i32
    %c1_i32_0 = arith.constant 1 : i32
    %2 = arith.minsi %1, %c1_i32_0 : i32
    %c0_i32 = arith.constant 0 : i32
    %c0_i32_1 = arith.constant 0 : i32
    return %2, %c0_i32 : i32, i32
  }
  func.func @transform_2(%arg0: i32, %arg1: i32) -> (i32, i32, i32) {
    %c0_i32 = arith.constant 0 : i32
    %c0_i32_0 = arith.constant 0 : i32
    %c0_i32_1 = arith.constant 0 : i32
    return %arg0, %c0_i32, %c0_i32_0 : i32, i32, i32
  }
}

</mosaic_0001>

<bundles_post_ra>
// kernel: charbonnier_loss.1
= control target key start
LH: loop header
LB: loop body
LE: loop exit
PB: predicated region body
PF: predicated region fallthrough
CT: control target
= control target key end

     0   :  { %s496_s9 = smov 0   ;;  %s498_s10 = smov 0   ;;  %s572_s0 = inlined_call_operand.vmem [shape: f32[128,128], index: 0, kind: input, shape index: {}]   ;;  %s573_s1 = inlined_call_operand.vmem [shape: f32[128,128], index: 1, kind: input, shape index: {}]   ;;  %s574_s2 = inlined_call_operand.vmem [shape: f32[2,8,128], index: 2, kind: output, shape index: {}]  }
   0x1   :  { %s500_s11 = smov 0  }
   0x2 LB: > { %s24_s12 = sadd.s32 1, %s475_s10  ;;  %p408_p0 = scmp.ge.s32.totalorder %s479_s11, 1  ;;  %s479_s11 = sphi %s500_s11, %s12_s11   ;;  %s475_s10 = sphi %s498_s10, %s576_s10   ;;  %s471_s9 = sphi %s496_s9, %s575_s9  }
   0x3   : > { %p26_p1 = scmp.ge.s32.totalorder %s24_s12, 2  ;;  %p160_p2 = scmp.lt.s32.totalorder %s479_s11, 3 }
   0x5   : > { %s578_s12 = smov (%p26_p1, %s24_s12), 0  ;;  %p161_p3 = pnand %p408_p0, %p160_p2 }
   0x6   : > { %p193_p4 = scmp.lt.s32.totalorder (!%p161_p3), %s471_s9, 1 }
   0x7   : > { %164 = sbr.rel (%p161_p3) target bundleno = 62 (0x3e), region = 28 }
   0xe   : > { %s580_s9 = smov (!%p193_p4, %s471_s9), 1 }
   0xf   : > { %s514_s13 = sshll.u32 %s580_s9, 3 }
  0x10   : > { %p196_p5 = scmp.lt.s32.totalorder %s514_s13, 15  ;;  %s219_s24 = scalar_lea.vmem %s574_s2, %s514_s13 }
  0x12   : > { %s197_s14 = scalar_select %p196_p5, %s514_s13, 15 }
  0x14   : > { %s410_s15 = sshll.u32 %s197_s14, 3 }
  0x15   : > { %s199_s18 = scalar_lea.vmem %s572_s0, %s410_s15  ;;  %s211_s21 = scalar_lea.vmem %s573_s1, %s410_s15 }
  0x16   : > { %v225_v0 = vld [vmem:[%s199_s18] sm:$0xff]  ;;  %v226_v1 = vld [vmem:[%s199_s18 + $0x8] sm:$0xff]  ;;  %v227_v2 = vld [vmem:[%s199_s18 + $0x10] sm:$0xff] }
  0x17   : > { %v228_v3 = vld [vmem:[%s199_s18 + $0x18] sm:$0xff]  ;;  %v229_v4 = vld [vmem:[%s199_s18 + $0x20] sm:$0xff]  ;;  %v230_v5 = vld [vmem:[%s199_s18 + $0x28] sm:$0xff] }
  0x18   : > { %v231_v6 = vld [vmem:[%s199_s18 + $0x30] sm:$0xff]  ;;  %v232_v7 = vld [vmem:[%s199_s18 + $0x38] sm:$0xff]  ;;  %v233_v8 = vld [vmem:[%s211_s21] sm:$0xff] }
  0x19   : > { %v234_v9 = vld [vmem:[%s211_s21 + $0x8] sm:$0xff]  ;;  %v235_v10 = vld [vmem:[%s211_s21 + $0x10] sm:$0xff]  ;;  %v236_v11 = vld [vmem:[%s211_s21 + $0x18] sm:$0xff]  ;;  %v241_v12 = vsub.f32 %v225_v0, %v233_v8 }
  0x1a   : > { %v237_v13 = vld [vmem:[%s211_s21 + $0x20] sm:$0xff]  ;;  %v238_v14 = vld [vmem:[%s211_s21 + $0x28] sm:$0xff]  ;;  %v239_v15 = vld [vmem:[%s211_s21 + $0x30] sm:$0xff]  ;;  %v242_v16 = vsub.f32 %v226_v1, %v234_v9  ;;  %v243_v17 = vsub.f32 %v227_v2, %v235_v10  ;;  %v244_v18 = vsub.f32 %v228_v3, %v236_v11 }
  0x1b   : > { %v240_v19 = vld [vmem:[%s211_s21 + $0x38] sm:$0xff]  ;;  %v245_v20 = vsub.f32 %v229_v4, %v237_v13  ;;  %v246_v21 = vsub.f32 %v230_v5, %v238_v14  ;;  %v247_v22 = vsub.f32 %v231_v6, %v239_v15  ;;  %v249_v23 = vmul.f32 %v241_v12, %v241_v12 }
  0x1c   : > { %v248_v24 = vsub.f32 %v232_v7, %v240_v19  ;;  %v250_v25 = vmul.f32 %v242_v16, %v242_v16  ;;  %v251_v26 = vmul.f32 %v243_v17, %v243_v17  ;;  %v252_v27 = vmul.f32 %v244_v18, %v244_v18 }
  0x1d   : > { %v253_v28 = vmul.f32 %v245_v20, %v245_v20  ;;  %v254_v29 = vmul.f32 %v246_v21, %v246_v21  ;;  %v257_v30 = vadd.f32 1e-06, %v249_v23  ;;  %v255_v31 = vmul.f32 %v247_v22, %v247_v22 }
  0x1e   : > { %v258_v32 = vadd.f32 1e-06, %v250_v25  ;;  %v259_v33 = vadd.f32 1e-06, %v251_v26  ;;  %v256_v34 = vmul.f32 %v248_v24, %v248_v24  ;;  %v260_v35 = vadd.f32 1e-06, %v252_v27 }
  0x1f   : > { %441 = vrsqrt.f32 %v257_v30  ;;  %v261_v36 = vadd.f32 1e-06, %v253_v28  ;;  %v524_v37 = vadd.f32 1e-06, %v254_v29  ;;  %v526_v38 = vadd.f32 1e-06, %v255_v31 }
  0x20   : > { %443 = vrsqrt.f32 %v258_v32  ;;  %v528_v39 = vadd.f32 1e-06, %v256_v34  ;;  %vm267_vm0 = vcmp.eq.f32.partialorder %v257_v30, inf  ;;  %vm269_vm1 = vcmp.eq.f32.partialorder %v257_v30, 0.0 }
  0x21   : > { %445 = vrsqrt.f32 %v259_v33  ;;  %v270_v41 = vand.u32 2147483648, %v257_v30  ;;  %vm274_vm2 = vcmp.eq.f32.partialorder %v258_v32, inf  ;;  %vm276_vm3 = vcmp.eq.f32.partialorder %v258_v32, 0.0 }
  0x22   : > { %447 = vrsqrt.f32 %v260_v35  ;;  %v277_v43 = vand.u32 2147483648, %v258_v32  ;;  %vm281_vm4 = vcmp.eq.f32.partialorder %v259_v33, inf  ;;  %vm283_vm5 = vcmp.eq.f32.partialorder %v259_v33, 0.0 }
  0x23   : > { %449 = vrsqrt.f32 %v261_v36  ;;  %v284_v45 = vand.u32 2147483648, %v259_v33  ;;  %vm288_vm6 = vcmp.eq.f32.partialorder %v260_v35, inf  ;;  %vm290_vm7 = vcmp.eq.f32.partialorder %v260_v35, 0.0 }
  0x24   : > { %451 = vrsqrt.f32 %v524_v37  ;;  %v291_v49 = vand.u32 2147483648, %v260_v35  ;;  %vm295_vm8 = vcmp.eq.f32.partialorder %v261_v36, inf  ;;  %vm297_vm9 = vcmp.eq.f32.partialorder %v261_v36, 0.0 }
  0x25   : > { %453 = vrsqrt.f32 %v526_v38  ;;  %v298_v56 = vand.u32 2147483648, %v261_v36  ;;  %vm302_vm10 = vcmp.eq.f32.partialorder %v524_v37, inf  ;;  %v305_v61 = vand.u32 2147483648, %v524_v37 }
  0x26   : > { %455 = vrsqrt.f32 %v528_v39  ;;  %vm309_vm11 = vcmp.eq.f32.partialorder %v526_v38, inf  ;;  %vm304_vm12 = vcmp.eq.f32.partialorder %v524_v37, 0.0  ;;  %v312_v11 = vand.u32 2147483648, %v526_v38 }
  0x27   : > { %vm316_vm13 = vcmp.eq.f32.partialorder %v528_v39, inf  ;;  %vm311_vm14 = vcmp.eq.f32.partialorder %v526_v38, 0.0  ;;  %v319_v15 = vand.u32 2147483648, %v528_v39  ;;  %vm318_vm15 = vcmp.eq.f32.partialorder %v528_v39, 0.0 }
  0x29   : > { %v442_v40 = vpop.eup %441 }
  0x2a   : > { %v266_v42 = vmul.f32 %v442_v40, %v257_v30  ;;  %v444_v44 = vpop.eup %443 }
  0x2b   : > { %v446_v46 = vpop.eup %445  ;;  %v273_v48 = vmul.f32 %v444_v44, %v258_v32 }
  0x2c   : > { %v268_v47 = vsel %vm267_vm0, %v257_v30, %v266_v42  ;;  %v448_v50 = vpop.eup %447  ;;  %v280_v52 = vmul.f32 %v446_v46, %v259_v33 }
  0x2d   : > { %v271_v51 = vsel %vm269_vm1, %v270_v41, %v268_v47  ;;  %v450_v53 = vpop.eup %449  ;;  %v275_v54 = vsel %vm274_vm2, %v258_v32, %v273_v48  ;;  %v287_v55 = vmul.f32 %v448_v50, %v260_v35 }
  0x2e   : > { %v452_v57 = vpop.eup %451  ;;  %v278_v58 = vsel %vm276_vm3, %v277_v43, %v275_v54  ;;  %v282_v59 = vsel %vm281_vm4, %v259_v33, %v280_v52  ;;  %v294_v60 = vmul.f32 %v450_v53, %v261_v36 }
  0x2f   : > { %v454_v62 = vpop.eup %453  ;;  %v285_v63 = vsel %vm283_vm5, %v284_v45, %v282_v59  ;;  %v289_v0 = vsel %vm288_vm6, %v260_v35, %v287_v55  ;;  %v301_v1 = vmul.f32 %v452_v57, %v524_v37  ;;  %v322_v2 = vadd.f32 %v278_v58, %v271_v51 }
  0x30   : > { %v456_v3 = vpop.eup %455  ;;  %v292_v4 = vsel %vm290_vm7, %v291_v49, %v289_v0  ;;  %v296_v5 = vsel %vm295_vm8, %v261_v36, %v294_v60  ;;  %v308_v6 = vmul.f32 %v454_v62, %v526_v38 }
  0x31   : > { %v303_v7 = vsel %vm302_vm10, %v524_v37, %v301_v1  ;;  %v315_v8 = vmul.f32 %v456_v3, %v528_v39  ;;  %v323_v9 = vadd.f32 %v322_v2, %v285_v63  ;;  %v299_v10 = vsel %vm297_vm9, %v298_v56, %v296_v5 }
  0x32   : > { %v310_v12 = vsel %vm309_vm11, %v526_v38, %v308_v6  ;;  %v306_v14 = vsel %vm304_vm12, %v305_v61, %v303_v7 }
  0x33   : > { %v324_v13 = vadd.f32 %v323_v9, %v292_v4  ;;  %v317_v16 = vsel %vm316_vm13, %v528_v39, %v315_v8  ;;  %v313_v18 = vsel %vm311_vm14, %v312_v11, %v310_v12 }
  0x34   : > { %v320_v20 = vsel %vm318_vm15, %v319_v15, %v317_v16 }
  0x35   : > { %v325_v17 = vadd.f32 %v324_v13, %v299_v10 }
  0x37   : > { %v326_v19 = vadd.f32 %v325_v17, %v306_v14 }
  0x39   : > { %v327_v21 = vadd.f32 %v326_v19, %v313_v18 }
  0x3b   : > { %v328_v22 = vadd.f32 %v327_v21, %v320_v20 }
  0x3d   : > { %330 = vst [vmem:[%s219_s24] sm:$0xff] %v328_v22 }
  0x3e PF: > { %s12_s11 = sadd.s32 1, %s479_s11   ;;  %s575_s9 = smov %s475_s10 }
  0x3f   : > { %p9_p6 = scmp.ge.s32.totalorder %s12_s11, 4   ;;  %s576_s10 = smov %s578_s12 }
  0x41   :  { %11 = sbr.rel (!%p9_p6) target bundleno = 2 (0x2), region = 65 }

</bundles_post_ra>
